<compile_context>
chip_gen: v7x
topology: tpu7x:2x2x1
jax: 0.10.0
libtpu: 0.0.40
codegen_flags: <defaults>
</compile_context>

<pallas_src>
import functools

import jax
import jax.numpy as jnp
from jax.experimental import pallas as pl
from jax.experimental.pallas import tpu as pltpu


# ----------------------------------------------------------------------------
# Kernel 1: fused patch embedding
# ----------------------------------------------------------------------------

def _embed_kernel(p_ref, w_ref, corr_ref, o_ref):
    # p: (1, S, P) bf16 zero-padded patches, w: (P, D) bf16, corr: (S, D) f32
    o_ref[0] = (
        jnp.dot(p_ref[0], w_ref[...], preferred_element_type=jnp.float32)
        + corr_ref[...]
    )


def embed(patches, patch_w_bf16, patch_b, cls_tok, pos):
    """patches: (B, Np, P) -> tokens (B, S=Np+1, D) with CLS + pos-embed."""
    B, Np, P = patches.shape
    D = patch_w_bf16.shape[1]
    S = Np + 1
    # Prepend a zero "patch" row for the CLS slot so the kernel is a single
    # matmul + add (no in-kernel concat); fold CLS token, patch bias and
    # position embedding into one additive f32 correction slab.
    patches_pad = jnp.pad(patches, ((0, 0), (1, 0), (0, 0))).astype(jnp.bfloat16)
    corr = pos + jnp.concatenate(
        [cls_tok, jnp.broadcast_to(patch_b, (Np, D))], axis=0)
    return pl.pallas_call(
        _embed_kernel,
        out_shape=jax.ShapeDtypeStruct((B, S, D), jnp.float32),
        grid=(B,),
        in_specs=[
            pl.BlockSpec((1, S, P), lambda i: (i, 0, 0)),
            pl.BlockSpec((P, D), lambda i: (0, 0)),
            pl.BlockSpec((S, D), lambda i: (0, 0)),
        ],
        out_specs=pl.BlockSpec((1, S, D), lambda i: (i, 0, 0)),
        compiler_params=pltpu.CompilerParams(
            dimension_semantics=("parallel",)),
    )(patches_pad, patch_w_bf16, corr)


# ----------------------------------------------------------------------------
# Kernel 2: one fused transformer layer (attention + MLP), activation resident
# ----------------------------------------------------------------------------

def _layer_kernel(x_ref, ln1g_ref, ln1b_ref, wqkv_ref, bqkv_ref, wo_ref, bo_ref,
                  ls1_ref, ln2g_ref, ln2b_ref, wfc1_ref, bfc1_ref,
                  wfc2_ref, bfc2_ref, ls2_ref, o_ref, ctx_ref, *, heads, eps):
    x = x_ref[0]                                          # (S, D) one sample
    S, D = x.shape
    Dh = D // heads

    def ln(v, g, b):
        mu = jnp.mean(v, axis=-1, keepdims=True)
        var = jnp.mean((v - mu) ** 2, axis=-1, keepdims=True)
        return (v - mu) * jax.lax.rsqrt(var + eps) * g + b

    # --- self-attention (pre-LN) -----------------------------------------
    # 1/sqrt(Dh) is pre-folded into the Q columns of wqkv/bqkv on the host.
    n1 = ln(x, ln1g_ref[...], ln1b_ref[...])              # (S, D) f32
    qkv = (jnp.dot(n1.astype(jnp.bfloat16), wqkv_ref[...],
                   preferred_element_type=jnp.float32)
           + bqkv_ref[...])                               # (S, 3D) f32
    q = qkv[:, 0:D]
    k = qkv[:, D:2 * D]
    v = qkv[:, 2 * D:3 * D]

    # Per-head scores / softmax / context.  Each head's context is written
    # into a lane-dense (S, D) VMEM scratch slab so the head-merge is free
    # and the output projection is a single K=D MXU matmul.
    # TODO(synk): at real DINOv2-large shapes (16 heads) replace this unrolled
    # loop with a head-batched dot_general (or a head grid axis) to avoid
    # per-head lane-subrange relayouts and instruction blow-up.
    contract_last = (((1,), (1,)), ((), ()))
    for h in range(heads):
        lo = h * Dh
        qh = q[:, lo:lo + Dh].astype(jnp.bfloat16)
        kh = k[:, lo:lo + Dh].astype(jnp.bfloat16)
        vh = v[:, lo:lo + Dh].astype(jnp.bfloat16)
        s = jax.lax.dot_general(
            qh, kh, contract_last,
            preferred_element_type=jnp.float32)            # (S, S), f32 stats
        s = s - jnp.max(s, axis=-1, keepdims=True)
        p = jnp.exp(s)
        p = p / jnp.sum(p, axis=-1, keepdims=True)         # exact divide (HF parity)
        ctx_ref[:, lo:lo + Dh] = jnp.dot(
            p.astype(jnp.bfloat16), vh, preferred_element_type=jnp.float32)

    attn_out = (jnp.dot(ctx_ref[...].astype(jnp.bfloat16), wo_ref[...],
                        preferred_element_type=jnp.float32)
                + bo_ref[...])                             # one (S,D)@(D,D)

    h1 = x + attn_out * ls1_ref[...]                       # residual + LayerScale1

    # --- MLP (pre-LN) -----------------------------------------------------
    n2 = ln(h1, ln2g_ref[...], ln2b_ref[...])
    m = (jnp.dot(n2.astype(jnp.bfloat16), wfc1_ref[...],
                 preferred_element_type=jnp.float32)
         + bfc1_ref[...])
    m = jax.nn.gelu(m, approximate=False)                  # exact erf-gelu (HF parity)
    # TODO(synk): approximate=True (tanh on EUP slot) if parity tolerance allows.
    m = (jnp.dot(m.astype(jnp.bfloat16), wfc2_ref[...],
                 preferred_element_type=jnp.float32)
         + bfc2_ref[...])

    o_ref[0] = h1 + m * ls2_ref[...]                       # residual + LayerScale2


def fused_layer(h, lyr, cfg):
    B, S, D = h.shape
    I = cfg.mlp
    kern = functools.partial(_layer_kernel, heads=cfg.heads, eps=cfg.eps)
    w2 = lambda i: (0, 0)   # grid-invariant (never re-DMA'd across the batch grid)
    # TODO(synk): at real shapes mark the grid-invariant weight specs below
    # with pipeline_mode=pl.Buffered(1) and stream w_fc1/w_fc2 in I-tiles.
    return pl.pallas_call(
        kern,
        out_shape=jax.ShapeDtypeStruct((B, S, D), jnp.float32),
        grid=(B,),
        in_specs=[
            pl.BlockSpec((1, S, D), lambda i: (i, 0, 0)),  # activation (f32)
            pl.BlockSpec((1, D), w2),        # ln1 gamma
            pl.BlockSpec((1, D), w2),        # ln1 beta
            pl.BlockSpec((D, 3 * D), w2),    # fused Wqkv (bf16, Q cols pre-scaled)
            pl.BlockSpec((1, 3 * D), w2),    # fused bqkv (f32, Q cols pre-scaled)
            pl.BlockSpec((D, D), w2),        # Wo (bf16)
            pl.BlockSpec((1, D), w2),        # bo
            pl.BlockSpec((1, D), w2),        # layerscale 1
            pl.BlockSpec((1, D), w2),        # ln2 gamma
            pl.BlockSpec((1, D), w2),        # ln2 beta
            pl.BlockSpec((D, I), w2),        # W fc1 (bf16)
            pl.BlockSpec((1, I), w2),        # b fc1
            pl.BlockSpec((I, D), w2),        # W fc2 (bf16)
            pl.BlockSpec((1, D), w2),        # b fc2
            pl.BlockSpec((1, D), w2),        # layerscale 2
        ],
        out_specs=pl.BlockSpec((1, S, D), lambda i: (i, 0, 0)),
        scratch_shapes=[pltpu.VMEM((S, D), jnp.float32)],   # merged-head context
        compiler_params=pltpu.CompilerParams(
            dimension_semantics=("parallel",),
            vmem_limit_bytes=48 * 1024 * 1024),
    )(h, lyr["ln1_g"], lyr["ln1_b"], lyr["wqkv"], lyr["bqkv"],
      lyr["wo"], lyr["bo"], lyr["ls1"], lyr["ln2_g"], lyr["ln2_b"],
      lyr["w_fc1"], lyr["b_fc1"], lyr["w_fc2"], lyr["b_fc2"], lyr["ls2"])


# ----------------------------------------------------------------------------
# Kernel 3: final LayerNorm fused with mean over the token axis (per-batch grid)
# ----------------------------------------------------------------------------

def _final_kernel(x_ref, g_ref, b_ref, o_ref, *, eps):
    x = x_ref[0]                                          # (S, D)
    mu = jnp.mean(x, axis=-1, keepdims=True)
    var = jnp.mean((x - mu) ** 2, axis=-1, keepdims=True)
    xhat = (x - mu) * jax.lax.rsqrt(var + eps) * g_ref[...] + b_ref[...]
    o_ref[...] = jnp.mean(xhat, axis=0, keepdims=True)    # (1, D)


def final_ln_mean(h, gamma, beta, eps):
    B, S, D = h.shape
    kern = functools.partial(_final_kernel, eps=eps)
    return pl.pallas_call(
        kern,
        out_shape=jax.ShapeDtypeStruct((B, D), jnp.float32),
        grid=(B,),
        in_specs=[
            pl.BlockSpec((1, S, D), lambda i: (i, 0, 0)),
            pl.BlockSpec((1, D), lambda i: (0, 0)),
            pl.BlockSpec((1, D), lambda i: (0, 0)),
        ],
        out_specs=pl.BlockSpec((1, D), lambda i: (i, 0)),
        compiler_params=pltpu.CompilerParams(
            dimension_semantics=("parallel",)),
    )(h, gamma.reshape(1, D), beta.reshape(1, D))


# ----------------------------------------------------------------------------
# Model glue (params, host-side prep, patch extraction, layer loop)
# ----------------------------------------------------------------------------

class Config:
    image_size = 16
    patch_size = 4
    num_channels = 3
    hidden = 128        # lane-dense last dim (multiple of 128)
    heads = 4
    layers = 2
    mlp = 512           # 4 * hidden
    eps = 1e-6
    layerscale_init = 1.0


def init_params(key, cfg):
    ks = iter(jax.random.split(key, 64))
    s = 0.02
    D, I = cfg.hidden, cfg.mlp
    patch_dim = cfg.num_channels * cfg.patch_size * cfg.patch_size
    num_patches = (cfg.image_size // cfg.patch_size) ** 2
    S = num_patches + 1

    def nrm(shape):
        return (s * jax.random.normal(next(ks), shape)).astype(jnp.float32)

    params = {
        "patch_w": nrm((patch_dim, D)),        # conv (D,C,ph,pw) reshaped/transposed
        "patch_b": jnp.zeros((1, D), jnp.float32),
        "cls": nrm((1, D)),
        "pos": nrm((S, D)),
        "final_ln_g": jnp.ones((D,), jnp.float32),
        "final_ln_b": jnp.zeros((D,), jnp.float32),
        "layers": [],
    }
    for _ in range(cfg.layers):
        params["layers"].append({
            "ln1_g": jnp.ones((1, D), jnp.float32),
            "ln1_b": jnp.zeros((1, D), jnp.float32),
            "wqkv": nrm((D, 3 * D)),                       # fused q|k|v
            "bqkv": jnp.zeros((1, 3 * D), jnp.float32),
            "wo": nrm((D, D)), "bo": jnp.zeros((1, D), jnp.float32),
            "ls1": jnp.full((1, D), cfg.layerscale_init, jnp.float32),
            "ln2_g": jnp.ones((1, D), jnp.float32),
            "ln2_b": jnp.zeros((1, D), jnp.float32),
            "w_fc1": nrm((D, I)), "b_fc1": jnp.zeros((1, I), jnp.float32),
            "w_fc2": nrm((I, D)), "b_fc2": jnp.zeros((1, D), jnp.float32),
            "ls2": jnp.full((1, D), cfg.layerscale_init, jnp.float32),
        })
    return params


def prepare_params(params, cfg):
    """One-time host-side prep:
       * fold the 1/sqrt(Dh) attention scale into the Q columns of wqkv/bqkv,
       * cast all matmul weights to bf16 (biases / LN / LayerScale stay f32)."""
    D = cfg.hidden
    scale = 1.0 / float(D // cfg.heads) ** 0.5
    out = dict(params)
    out["patch_w"] = params["patch_w"].astype(jnp.bfloat16)
    layers = []
    for lyr in params["layers"]:
        l = dict(lyr)
        l["wqkv"] = lyr["wqkv"].at[:, :D].multiply(scale).astype(jnp.bfloat16)
        l["bqkv"] = lyr["bqkv"].at[:, :D].multiply(scale)
        l["wo"] = lyr["wo"].astype(jnp.bfloat16)
        l["w_fc1"] = lyr["w_fc1"].astype(jnp.bfloat16)
        l["w_fc2"] = lyr["w_fc2"].astype(jnp.bfloat16)
        layers.append(l)
    out["layers"] = layers
    return out


def patchify(x, cfg):
    """NCHW -> (B, num_patches, C*ph*pw), matching Conv2d(stride=patch)."""
    B, C, H, W = x.shape
    p = cfg.patch_size
    Hp, Wp = H // p, W // p
    x = x.reshape(B, C, Hp, p, Wp, p)
    x = x.transpose(0, 2, 4, 1, 3, 5)            # (B, Hp, Wp, C, ph, pw)
    return x.reshape(B, Hp * Wp, C * p * p)


def dinov2_forward(params, x, cfg):
    # --- embeddings: patch matmul + CLS + pos (one fused kernel) ---------
    patches = patchify(x, cfg)                                   # XLA glue
    h = embed(patches, params["patch_w"], params["patch_b"],
              params["cls"], params["pos"])                      # (B, S, D)

    # --- transformer layers: one fused kernel per layer ------------------
    # TODO(synk): at real shapes with small B, prefetch layer l+1 weights
    # under layer l compute (layer grid axis or cross-call DMA futures).
    for lyr in params["layers"]:
        h = fused_layer(h, lyr, cfg)

    # --- final layernorm + mean over tokens (per-batch parallel kernel) --
    return final_ln_mean(h, params["final_ln_g"], params["final_ln_b"],
                         cfg.eps)                                # (B, D)


if __name__ == "__main__":
    cfg = Config()
    key = jax.random.PRNGKey(0)
    kp, kx = jax.random.split(key)
    params = prepare_params(init_params(kp, cfg), cfg)
    x = jax.random.normal(
        kx, (2, cfg.num_channels, cfg.image_size, cfg.image_size), jnp.float32)

    out = dinov2_forward(params, x, cfg)
    jax.block_until_ready(out)
    assert out.shape == (2, cfg.hidden), out.shape
    assert jnp.all(jnp.isfinite(out))
    print("KERNEL_OK")
</pallas_src>

<mosaic_0001>
module attributes {stable_mosaic.version = 11 : i64} {
  func.func @_embed_kernel(%arg0: i32, %arg1: memref<1x17x48xbf16, #tpu.memory_space<vmem>>, %arg2: memref<48x128xbf16, #tpu.memory_space<vmem>>, %arg3: memref<17x128xf32, #tpu.memory_space<vmem>>, %arg4: memref<1x17x128xf32, #tpu.memory_space<vmem>>) attributes {dimension_semantics = [#tpu.dimension_semantics<parallel>], iteration_bounds = array<i64: 2>, scalar_prefetch = 0 : i64, scratch_operands = 0 : i64, tpu.core_type = #tpu.core_type<tc>, window_params = [{transform_indices = @transform_0, window_bounds = array<i64: 1, 17, 48>}, {pipeline_mode = #tpu.pipeline_mode<synchronous>, transform_indices = @transform_1, window_bounds = array<i64: 48, 128>}, {pipeline_mode = #tpu.pipeline_mode<synchronous>, transform_indices = @transform_2, window_bounds = array<i64: 17, 128>}, {transform_indices = @transform_3, window_bounds = array<i64: 1, 17, 128>}]} {
    %c0 = arith.constant 0 : index
    %c0_0 = arith.constant 0 : index
    %c0_1 = arith.constant 0 : index
    %0 = vector.load %arg1[%c0, %c0_0, %c0_1] : memref<1x17x48xbf16, #tpu.memory_space<vmem>>, vector<1x17x48xbf16>
    %1 = vector.shape_cast %0 : vector<1x17x48xbf16> to vector<17x48xbf16>
    %c0_2 = arith.constant 0 : index
    %c0_3 = arith.constant 0 : index
    %2 = vector.load %arg2[%c0_2, %c0_3] : memref<48x128xbf16, #tpu.memory_space<vmem>>, vector<48x128xbf16>
    %cst = arith.constant dense<0.000000e+00> : vector<17x128xf32>
    %3 = tpu.matmul %1, %2, %cst {dimension_numbers = #tpu.dot_dimension_numbers<[1], [0], [0], [1], [0, 0, 1, 1], [], []>} : vector<17x48xbf16>, vector<48x128xbf16>, vector<17x128xf32> -> vector<17x128xf32>
    %c0_4 = arith.constant 0 : index
    %c0_5 = arith.constant 0 : index
    %4 = vector.load %arg3[%c0_4, %c0_5] : memref<17x128xf32, #tpu.memory_space<vmem>>, vector<17x128xf32>
    %5 = arith.addf %3, %4 : vector<17x128xf32>
    %c0_6 = arith.constant 0 : index
    %c0_7 = arith.constant 0 : index
    %c0_8 = arith.constant 0 : index
    %6 = vector.load %arg4[%c0_6, %c0_7, %c0_8] : memref<1x17x128xf32, #tpu.memory_space<vmem>>, vector<1x17x128xf32>
    %7 = vector.shape_cast %6 : vector<1x17x128xf32> to vector<17x128xf32>
    %8 = vector.shape_cast %5 : vector<17x128xf32> to vector<1x17x128xf32>
    tpu.vector_store %arg4[%c0_6, %c0_7, %c0_8], %8 {strides = array<i32>} : memref<1x17x128xf32, #tpu.memory_space<vmem>>, vector<1x17x128xf32>,
    return
  }
  func.func @transform_0(%arg0: i32) -> (i32, i32, i32) {
    %c0_i32 = arith.constant 0 : i32
    %c0_i32_0 = arith.constant 0 : i32
    %c0_i32_1 = arith.constant 0 : i32
    return %arg0, %c0_i32, %c0_i32_0 : i32, i32, i32
  }
  func.func @transform_1(%arg0: i32) -> (i32, i32) {
    %c0_i32 = arith.constant 0 : i32
    %c0_i32_0 = arith.constant 0 : i32
    %c0_i32_1 = arith.constant 0 : i32
    return %c0_i32, %c0_i32_0 : i32, i32
  }
  func.func @transform_2(%arg0: i32) -> (i32, i32) {
    %c0_i32 = arith.constant 0 : i32
    %c0_i32_0 = arith.constant 0 : i32
    %c0_i32_1 = arith.constant 0 : i32
    return %c0_i32, %c0_i32_0 : i32, i32
  }
  func.func @transform_3(%arg0: i32) -> (i32, i32, i32) {
    %c0_i32 = arith.constant 0 : i32
    %c0_i32_0 = arith.constant 0 : i32
    %c0_i32_1 = arith.constant 0 : i32
    return %arg0, %c0_i32, %c0_i32_0 : i32, i32, i32
  }
}

</mosaic_0001>

<bundles_post_ra>
// kernel: tpu_custom_call.1
= control target key start
LH: loop header
LB: loop body
LE: loop exit
PB: predicated region body
PF: predicated region fallthrough
CT: control target
= control target key end

     0   :  { %s397_s12 = smov 0   ;;  %s432_s0 = inlined_call_operand.vmem [shape: bf16[2,17,48], index: 0, kind: input, shape index: {}]   ;;  %s433_s1 = inlined_call_operand.vmem [shape: bf16[48,128], index: 1, kind: input, shape index: {}]   ;;  %s434_s2 = inlined_call_operand.vmem [shape: f32[17,128], index: 2, kind: input, shape index: {}]   ;;  %s435_s3 = inlined_call_operand.vmem [shape: f32[2,17,128], index: 3, kind: output, shape index: {}]  }
   0x1 LB: > { %s323_s13 = sadd.s32 4294967295, %s375_s12   ;;  %p327_p0 = scmp.ge.s32.totalorder %s375_s12, 1  ;;  %s375_s12 = sphi %s397_s12, %s13_s12  }
   0x2   : > { %p137_p1 = scmp.lt.s32.totalorder %s375_s12, 3 }
   0x4   : > { %p138_p2 = pnand %p327_p0, %p137_p1 }
   0x5   : > { %v364_v0 = vld [vmem:[%s433_s1] sm:$0xff] (!%p138_p2)   ;;  %p161_p3 = scmp.lt.s32.totalorder (!%p138_p2), %s323_s13, 1  ;;  %v365_v1 = vld [vmem:[%s433_s1 + $0x8] sm:$0xff] (!%p138_p2)   ;;  %v366_v2 = vld [vmem:[%s433_s1 + $0x10] sm:$0xff] (!%p138_p2)   ;;  %vm210_vm0 = vcmask (!%p138_p2), 392192  }
   0x6   : > { %141 = sbr.rel (%p138_p2) target bundleno = 237 (0xed), region = 32  ;;  %344 = vmatprep.subr.bf16.mxu0 (!%p138_p2), %v364_v0  ;;  %v183_v5 = vld [vmem:[%s434_s2 + $0x10] sm:$0x1] (!%p138_p2)  ;;  %v181_v6 = vld [vmem:[%s434_s2] sm:$0xff] (!%p138_p2)  ;;  %v182_v10 = vld [vmem:[%s434_s2 + $0x8] sm:$0xff] (!%p138_p2) }
   0x7   : > { %345 = vmatpush3.bf16.msra.mxu0 (!%p138_p2), %v364_v0 }
   0x8   : > { %346 = vmatprep.subr.bf16.mxu0 (!%p138_p2), %v365_v1 }
   0xb   : > { %347 = vmatpush3.bf16.msra.mxu0 (!%p138_p2), %v365_v1 }
   0xc   : > { %348 = vmatprep.subr.bf16.mxu0 (!%p138_p2), %v366_v2 }
   0xd   : > { %s437_s13 = smov (!%p161_p3, %s323_s13), 1 }
   0xe   : > { %s354_s20 = smul.u32 12, %s437_s13 }
   0xf   : > { %349 = vmatpush3.bf16.msra.mxu0 %v366_v2  ;;  %s355_s24 = smul.u32 24, %s437_s13 }
  0x10   : > { %s165_s23 = scalar_lea.vmem %s432_s0, %s354_s20 }
  0x11   : > { %v367_v3 = vld [vmem:[%s165_s23] sm:$0xff]   ;;  %v368_v4 = vld [vmem:[%s165_s23 + $0x8] ss:$0 sps:$4 sm:$0x11]   ;;  %s170_s4 = scalar_lea.vmem %s435_s3, %s355_s24 }
  0x12   : > { %350 = vmatprep.mubr.msk.bf16.mxu0 %vm210_vm0, %v367_v3 }
  0x13   : > { %351 = vmatmul.mubr.msk.bf16.vlgmr.msra.gmra.mrb[0].mxu0 %vm210_vm0, %v368_v4 }
  0xe6   : > { %v352_v7 = vpop.f32.mrb[0].mxu0 }
  0xe7   : > { %v260_v8 = vadd.f32 %v352_v7, %v183_v5  ;;  %v251_v9 = vpop.f32.mrb[1].mxu0 }
  0xe8   : > { %v252_v11 = vadd.f32 %v251_v9, %v181_v6  ;;  %v353_v12 = vpop.f32.mrb[2].mxu0 }
  0xe9   : > { %267 = vst [vmem:[%s170_s4 + $0x10] sm:$0x1] %v260_v8  ;;  %v254_v13 = vpop.f32.mrb[3].mxu0 }
  0xea   : > { %265 = vst [vmem:[%s170_s4] sm:$0xff] %v252_v11  ;;  %v255_v14 = vadd.f32 %v254_v13, %v182_v10 }
  0xec   : > { %266 = vst [vmem:[%s170_s4 + $0x8] sm:$0xff] %v255_v14 }
  0xed PF: > { %s13_s12 = sadd.s32 1, %s375_s12  }
  0xee   : > { %p10_p4 = scmp.ge.s32.totalorder %s13_s12, 4  }
  0xf0   :  { %12 = sbr.rel (!%p10_p4) target bundleno = 1 (0x1), region = 62 }

</bundles_post_ra>
